<compile_context>
chip_gen: v5e
topology: v5e:2x2
jax: 0.10.0
libtpu: 0.0.40
codegen_flags: <defaults>
</compile_context>

<pallas_src>
import jax
import jax.numpy as jnp
import numpy as np
from jax.experimental import pallas as pl
from jax.experimental.pallas import tpu as pltpu


def _cough_predict_kernel(x_ref, mask_ref, inv_len_ref, wp_ref, bp_ref, wc_ref,
                          bc_ref, out_ref, acc_ref):
    """grid = (batch tiles [parallel], time tiles [arbitrary / reduction])."""
    t = pl.program_id(1)

    @pl.when(t == 0)
    def _init():
        acc_ref[...] = jnp.zeros_like(acc_ref)

    # ---- pool-first: masked partial sum of the *raw* features over this time tile ----
    x = x_ref[...].astype(jnp.float32)          # (bt, tt, D)  bf16 -> f32 in vregs
    m = mask_ref[...]                           # (bt, tt, 1)  float32 0/1 validity
    acc_ref[...] += jnp.sum(x * m, axis=1)      # (bt, D) running masked sum
    # TODO(synk): on production shapes push this sublane reduction onto the MXU via a
    # batched contraction (einsum('bt,btd->bd')) to free VALU/XLU slots under the DMA.

    # ---- finalize on the last time tile: mean -> projector -> classifier -> argmax ----
    @pl.when(t == pl.num_programs(1) - 1)
    def _finalize():
        pooled = acc_ref[...] * inv_len_ref[...]                        # (bt, D) masked mean
        h = jnp.dot(pooled, wp_ref[...],
                    preferred_element_type=jnp.float32) + bp_ref[...]   # (bt, P)
        logits = jnp.dot(h, wc_ref[...],
                         preferred_element_type=jnp.float32) + bc_ref[...]  # (bt, 2)
        # argmax over C=2 with first-occurrence tie-break == (logit1 > logit0)
        out_ref[...] = (logits[:, 1:2] > logits[:, 0:1]).astype(jnp.int32)


def cough_predict(features_list, wp, bp, wc, bc, *, t_tile=8, b_tile=None,
                  x_dtype=jnp.bfloat16):
    """features_list: python list of (len_i, upstream_dim) float arrays."""
    B = len(features_list)
    D = int(features_list[0].shape[1])
    P = int(wp.shape[1])
    C = int(wc.shape[1])
    assert C == 2, "CoughPredict classifier is hard-wired to output_dim=2"
    assert t_tile % 8 == 0, "time tile must be sublane-aligned (multiple of 8)"
    if b_tile is None:
        b_tile = B
    assert B % b_tile == 0 and (b_tile == B or b_tile % 8 == 0)

    lens = np.asarray([int(f.shape[0]) for f in features_list], dtype=np.int32)
    # Bucket T to a multiple of the time tile: bounds recompiles, keeps blocks aligned.
    t_pad = max(t_tile, t_tile * int(-(-int(lens.max()) // t_tile)))

    # pad_sequence(batch_first=True) equivalent + bf16 streaming cast (mem-bound kernel).
    x = jnp.stack(
        [jnp.pad(f, ((0, t_pad - f.shape[0]), (0, 0))) for f in features_list]
    ).astype(x_dtype)                                                    # (B, Tpad, D)

    # 0/1 validity mask and 1/len (len>=1 guard), built host-side: tiny vs. the x stream.
    valid = (np.arange(t_pad)[None, :] < lens[:, None]).astype(np.float32)
    mask = jnp.asarray(valid[:, :, None])                                # (B, Tpad, 1)
    inv_len = jnp.asarray(
        1.0 / np.maximum(lens, 1).astype(np.float32))[:, None]           # (B, 1)

    n_b = B // b_tile
    n_t = t_pad // t_tile

    flops = 2 * B * t_pad * D + 2 * B * D * P + 2 * B * P * C
    bytes_accessed = (int(x.size) * x.dtype.itemsize + int(mask.size) * 4
                      + 4 * int(wp.size + bp.size + wc.size + bc.size + inv_len.size)
                      + B * 4)

    out = pl.pallas_call(
        _cough_predict_kernel,
        out_shape=jax.ShapeDtypeStruct((B, 1), jnp.int32),
        grid_spec=pltpu.PrefetchScalarGridSpec(
            num_scalar_prefetch=0,
            grid=(n_b, n_t),
            in_specs=[
                pl.BlockSpec((b_tile, t_tile, D), lambda b, t: (b, t, 0)),  # features
                pl.BlockSpec((b_tile, t_tile, 1), lambda b, t: (b, t, 0)),  # valid mask
                pl.BlockSpec((b_tile, 1), lambda b, t: (b, 0)),             # 1 / len
                pl.BlockSpec((D, P), lambda b, t: (0, 0)),                  # projector W
                pl.BlockSpec((1, P), lambda b, t: (0, 0)),                  # projector b
                pl.BlockSpec((P, C), lambda b, t: (0, 0)),                  # classifier W
                pl.BlockSpec((1, C), lambda b, t: (0, 0)),                  # classifier b
            ],
            out_specs=pl.BlockSpec((b_tile, 1), lambda b, t: (b, 0)),
            scratch_shapes=[pltpu.VMEM((b_tile, D), jnp.float32)],
        ),
        compiler_params=pltpu.CompilerParams(
            # batch tiles are independent (v7x dual-TC sharding); time is a reduction.
            dimension_semantics=("parallel", "arbitrary"),
            # NOTE: for real s3prl shapes, pick t_tile/b_tile so the bf16 feature block
            # is ~4-8 MiB on v7x (64 MiB VMEM) or 16-32 MiB on v5e/v6e, and raise
            # vmem_limit_bytes accordingly.
        ),
        cost_estimate=pl.CostEstimate(
            flops=int(flops), transcendentals=0, bytes_accessed=int(bytes_accessed)),
    )(x, mask, inv_len, wp, bp, wc, bc)
    return out[:, 0]  # (B,) predicted class ids


def _reference(features_list, wp, bp, wc, bc, x_dtype=jnp.bfloat16):
    """Module-order reference: project every frame, then mean-pool, then classify."""
    outs = []
    for f in features_list:
        fq = f.astype(x_dtype).astype(jnp.float32)   # same streaming quantization as kernel
        h = fq @ wp + bp[0]                          # projector on all frames
        pooled = h.mean(axis=0)                      # UtteranceLevel mean pool
        logits = pooled @ wc + bc[0]
        outs.append(jnp.argmax(logits))
    return jnp.stack(outs).astype(jnp.int32)


if __name__ == "__main__":
    # small shapes consistent with the module:
    #   upstream_dim=32, projector_dim=32, output_dim=2, batch=2
    # variable-length utterances -> T padded to 24 -> 3 time tiles of 8
    upstream_dim, projector_dim, num_classes = 32, 32, 2
    seq_lens = [17, 9]

    key = jax.random.PRNGKey(0)
    k_feat, k_wp, k_bp, k_wc, k_bc = jax.random.split(key, 5)

    # deterministic synthetic "parameters" (no checkpoint load)
    wp = 0.1 * jax.random.normal(k_wp, (upstream_dim, projector_dim), jnp.float32)
    bp = 0.1 * jax.random.normal(k_bp, (1, projector_dim), jnp.float32)
    wc = 0.1 * jax.random.normal(k_wc, (projector_dim, num_classes), jnp.float32)
    bc = 0.1 * jax.random.normal(k_bc, (1, num_classes), jnp.float32)

    # variable-length feature list (as CoughPredict.forward receives)
    feat_keys = jax.random.split(k_feat, len(seq_lens))
    features = [
        jax.random.normal(fk, (L, upstream_dim), jnp.float32)
        for fk, L in zip(feat_keys, seq_lens)
    ]

    pred = cough_predict(features, wp, bp, wc, bc)
    pred = jax.block_until_ready(pred)

    ref = _reference(features, wp, bp, wc, bc)
    np.testing.assert_array_equal(np.asarray(pred), np.asarray(ref))

    print("KERNEL_OK")
</pallas_src>

<mosaic_0001>
module attributes {stable_mosaic.version = 11 : i64} {
  func.func @_cough_predict_kernel(%arg0: i32, %arg1: i32, %arg2: memref<2x8x32xbf16, #tpu.memory_space<vmem>>, %arg3: memref<2x8x1xf32, #tpu.memory_space<vmem>>, %arg4: memref<2x1xf32, #tpu.memory_space<vmem>>, %arg5: memref<32x32xf32, #tpu.memory_space<vmem>>, %arg6: memref<1x32xf32, #tpu.memory_space<vmem>>, %arg7: memref<32x2xf32, #tpu.memory_space<vmem>>, %arg8: memref<1x2xf32, #tpu.memory_space<vmem>>, %arg9: memref<2x1xi32, #tpu.memory_space<vmem>>, %arg10: memref<2x32xf32, #tpu.memory_space<vmem>>) attributes {dimension_semantics = [#tpu.dimension_semantics<parallel>, #tpu.dimension_semantics<arbitrary>], iteration_bounds = array<i64: 1, 3>, scalar_prefetch = 0 : i64, scratch_operands = 1 : i64, tpu.core_type = #tpu.core_type<tc>, window_params = [{transform_indices = @transform_0, window_bounds = array<i64: 2, 8, 32>}, {transform_indices = @transform_1, window_bounds = array<i64: 2, 8, 1>}, {transform_indices = @transform_2, window_bounds = array<i64: 2, 1>}, {pipeline_mode = #tpu.pipeline_mode<synchronous>, transform_indices = @transform_3, window_bounds = array<i64: 32, 32>}, {pipeline_mode = #tpu.pipeline_mode<synchronous>, transform_indices = @transform_4, window_bounds = array<i64: 1, 32>}, {pipeline_mode = #tpu.pipeline_mode<synchronous>, transform_indices = @transform_5, window_bounds = array<i64: 32, 2>}, {pipeline_mode = #tpu.pipeline_mode<synchronous>, transform_indices = @transform_6, window_bounds = array<i64: 1, 2>}, {transform_indices = @transform_7, window_bounds = array<i64: 2, 1>}]} {
    %c0_i32 = arith.constant 0 : i32
    %0 = arith.cmpi eq, %arg1, %c0_i32 : i32
    %1 = arith.extui %0 : i1 to i32
    %c0_i32_0 = arith.constant 0 : i32
    %2 = arith.cmpi ne, %1, %c0_i32_0 : i32
    scf.if %2 {
      %cst_11 = arith.constant 0.000000e+00 : f32
      %15 = vector.broadcast %cst_11 : f32 to vector<2x32xf32>
      %c0_12 = arith.constant 0 : index
      %c0_13 = arith.constant 0 : index
      %16 = vector.load %arg10[%c0_12, %c0_13] : memref<2x32xf32, #tpu.memory_space<vmem>>, vector<2x32xf32>
      tpu.vector_store %arg10[%c0_12, %c0_13], %15 {strides = array<i32>} : memref<2x32xf32, #tpu.memory_space<vmem>>, vector<2x32xf32>,
    } else {
    }
    %c0 = arith.constant 0 : index
    %c0_1 = arith.constant 0 : index
    %c0_2 = arith.constant 0 : index
    %3 = vector.load %arg2[%c0, %c0_1, %c0_2] : memref<2x8x32xbf16, #tpu.memory_space<vmem>>, vector<2x8x32xbf16>
    %4 = arith.extf %3 : vector<2x8x32xbf16> to vector<2x8x32xf32>
    %c0_3 = arith.constant 0 : index
    %c0_4 = arith.constant 0 : index
    %c0_5 = arith.constant 0 : index
    %5 = vector.load %arg3[%c0_3, %c0_4, %c0_5] : memref<2x8x1xf32, #tpu.memory_space<vmem>>, vector<2x8x1xf32>
    %c0_6 = arith.constant 0 : index
    %c0_7 = arith.constant 0 : index
    %6 = vector.load %arg10[%c0_6, %c0_7] : memref<2x32xf32, #tpu.memory_space<vmem>>, vector<2x32xf32>
    %7 = vector.broadcast %5 : vector<2x8x1xf32> to vector<2x8x32xf32>
    %8 = arith.mulf %4, %7 : vector<2x8x32xf32>
    %cst = arith.constant dense<0.000000e+00> : vector<2x32xf32>
    %9 = vector.multi_reduction <add>, %8, %cst [1] : vector<2x8x32xf32> to vector<2x32xf32>
    %10 = arith.addf %6, %9 : vector<2x32xf32>
    %c0_8 = arith.constant 0 : index
    %c0_9 = arith.constant 0 : index
    %11 = vector.load %arg10[%c0_8, %c0_9] : memref<2x32xf32, #tpu.memory_space<vmem>>, vector<2x32xf32>
    tpu.vector_store %arg10[%c0_8, %c0_9], %10 {strides = array<i32>} : memref<2x32xf32, #tpu.memory_space<vmem>>, vector<2x32xf32>,
    %c2_i32 = arith.constant 2 : i32
    %12 = arith.cmpi eq, %arg1, %c2_i32 : i32
    %13 = arith.extui %12 : i1 to i32
    %c0_i32_10 = arith.constant 0 : i32
    %14 = arith.cmpi ne, %13, %c0_i32_10 : i32
    scf.if %14 {
      %c0_11 = arith.constant 0 : index
      %c0_12 = arith.constant 0 : index
      %15 = vector.load %arg10[%c0_11, %c0_12] : memref<2x32xf32, #tpu.memory_space<vmem>>, vector<2x32xf32>
      %c0_13 = arith.constant 0 : index
      %c0_14 = arith.constant 0 : index
      %16 = vector.load %arg4[%c0_13, %c0_14] : memref<2x1xf32, #tpu.memory_space<vmem>>, vector<2x1xf32>
      %17 = vector.broadcast %16 : vector<2x1xf32> to vector<2x32xf32>
      %18 = arith.mulf %15, %17 : vector<2x32xf32>
      %c0_15 = arith.constant 0 : index
      %c0_16 = arith.constant 0 : index
      %19 = vector.load %arg5[%c0_15, %c0_16] : memref<32x32xf32, #tpu.memory_space<vmem>>, vector<32x32xf32>
      %cst_17 = arith.constant dense<0.000000e+00> : vector<2x32xf32>
      %20 = tpu.matmul %18, %19, %cst_17 {dimension_numbers = #tpu.dot_dimension_numbers<[1], [0], [0], [1], [0, 0, 1, 1], [], []>} : vector<2x32xf32>, vector<32x32xf32>, vector<2x32xf32> -> vector<2x32xf32>
      %c0_18 = arith.constant 0 : index
      %c0_19 = arith.constant 0 : index
      %21 = vector.load %arg6[%c0_18, %c0_19] : memref<1x32xf32, #tpu.memory_space<vmem>>, vector<1x32xf32>
      %22 = vector.broadcast %21 : vector<1x32xf32> to vector<2x32xf32>
      %23 = arith.addf %20, %22 : vector<2x32xf32>
      %c0_20 = arith.constant 0 : index
      %c0_21 = arith.constant 0 : index
      %24 = vector.load %arg7[%c0_20, %c0_21] : memref<32x2xf32, #tpu.memory_space<vmem>>, vector<32x2xf32>
      %cst_22 = arith.constant dense<0.000000e+00> : vector<2x2xf32>
      %25 = tpu.matmul %23, %24, %cst_22 {dimension_numbers = #tpu.dot_dimension_numbers<[1], [0], [0], [1], [0, 0, 1, 1], [], []>} : vector<2x32xf32>, vector<32x2xf32>, vector<2x2xf32> -> vector<2x2xf32>
      %c0_23 = arith.constant 0 : index
      %c0_24 = arith.constant 0 : index
      %26 = vector.load %arg8[%c0_23, %c0_24] : memref<1x2xf32, #tpu.memory_space<vmem>>, vector<1x2xf32>
      %27 = vector.broadcast %26 : vector<1x2xf32> to vector<2x2xf32>
      %28 = arith.addf %25, %27 : vector<2x2xf32>
      %29 = vector.extract_strided_slice %28 {offsets = [0, 1], sizes = [2, 1], strides = [1, 1]} : vector<2x2xf32> to vector<2x1xf32>
      %30 = vector.extract_strided_slice %28 {offsets = [0, 0], sizes = [2, 1], strides = [1, 1]} : vector<2x2xf32> to vector<2x1xf32>
      %31 = arith.cmpf ogt, %29, %30 : vector<2x1xf32>
      %32 = arith.extui %31 : vector<2x1xi1> to vector<2x1xi32>
      %c0_25 = arith.constant 0 : index
      %c0_26 = arith.constant 0 : index
      %33 = vector.load %arg9[%c0_25, %c0_26] : memref<2x1xi32, #tpu.memory_space<vmem>>, vector<2x1xi32>
      tpu.vector_store %arg9[%c0_25, %c0_26], %32 {strides = array<i32>} : memref<2x1xi32, #tpu.memory_space<vmem>>, vector<2x1xi32>,
    } else {
    }
    return
  }
  func.func @transform_0(%arg0: i32, %arg1: i32) -> (i32, i32, i32) {
    %c0_i32 = arith.constant 0 : i32
    %c0_i32_0 = arith.constant 0 : i32
    return %arg0, %arg1, %c0_i32 : i32, i32, i32
  }
  func.func @transform_1(%arg0: i32, %arg1: i32) -> (i32, i32, i32) {
    %c0_i32 = arith.constant 0 : i32
    %c0_i32_0 = arith.constant 0 : i32
    return %arg0, %arg1, %c0_i32 : i32, i32, i32
  }
  func.func @transform_2(%arg0: i32, %arg1: i32) -> (i32, i32) {
    %c0_i32 = arith.constant 0 : i32
    %c0_i32_0 = arith.constant 0 : i32
    return %arg0, %c0_i32 : i32, i32
  }
  func.func @transform_3(%arg0: i32, %arg1: i32) -> (i32, i32) {
    %c0_i32 = arith.constant 0 : i32
    %c0_i32_0 = arith.constant 0 : i32
    %c0_i32_1 = arith.constant 0 : i32
    return %c0_i32, %c0_i32_0 : i32, i32
  }
  func.func @transform_4(%arg0: i32, %arg1: i32) -> (i32, i32) {
    %c0_i32 = arith.constant 0 : i32
    %c0_i32_0 = arith.constant 0 : i32
    %c0_i32_1 = arith.constant 0 : i32
    return %c0_i32, %c0_i32_0 : i32, i32
  }
  func.func @transform_5(%arg0: i32, %arg1: i32) -> (i32, i32) {
    %c0_i32 = arith.constant 0 : i32
    %c0_i32_0 = arith.constant 0 : i32
    %c0_i32_1 = arith.constant 0 : i32
    return %c0_i32, %c0_i32_0 : i32, i32
  }
  func.func @transform_6(%arg0: i32, %arg1: i32) -> (i32, i32) {
    %c0_i32 = arith.constant 0 : i32
    %c0_i32_0 = arith.constant 0 : i32
    %c0_i32_1 = arith.constant 0 : i32
    return %c0_i32, %c0_i32_0 : i32, i32
  }
  func.func @transform_7(%arg0: i32, %arg1: i32) -> (i32, i32) {
    %c0_i32 = arith.constant 0 : i32
    %c0_i32_0 = arith.constant 0 : i32
    return %arg0, %c0_i32 : i32, i32
  }
}

</mosaic_0001>

<bundles_post_ra>
// kernel: tpu_custom_call.1
= control target key start
LH: loop header
LB: loop body
LE: loop exit
PB: predicated region body
PF: predicated region fallthrough
CT: control target
= control target key end

     0   :  { %s814_s24 = smov 0   ;;  %s816_s25 = smov 0   ;;  %s930_s0 = inlined_call_operand.vmem [shape: bf16[2,24,32], index: 0, kind: input, shape index: {}]   ;;  %s931_s1 = inlined_call_operand.vmem [shape: f32[2,24,1], index: 1, kind: input, shape index: {}]   ;;  %s932_s2 = inlined_call_operand.vmem [shape: f32[2,1], index: 2, kind: input, shape index: {}]   ;;  %s933_s3 = inlined_call_operand.vmem [shape: f32[32,32], index: 3, kind: input, shape index: {}]   ;;  %s934_s4 = inlined_call_operand.vmem [shape: f32[1,32], index: 4, kind: input, shape index: {}]   ;;  %s935_s5 = inlined_call_operand.vmem [shape: f32[32,2], index: 5, kind: input, shape index: {}]   ;;  %s936_s6 = inlined_call_operand.vmem [shape: f32[1,2], index: 6, kind: input, shape index: {}]   ;;  %s937_s7 = inlined_call_operand.vmem [shape: s32[2,1], index: 7, kind: output, shape index: {}]  }
   0x1   :  { %s818_s26 = smov 0   ;;  %s820_s27 = smov 0  }
   0x2   :  { %s822_s28 = smov 0  }
   0x3 LB: > { %s26_s29 = sadd.s32 1, %s763_s27  ;;  %p45_p1 = scmp.ne.s32.totalorder %s755_s25, %s751_s24  ;;  %s767_s28 = sphi %s822_s28, %s17_s28   ;;  %s763_s27 = sphi %s820_s27, %s942_s27   ;;  %s759_s26 = sphi %s818_s26, %s941_s26   ;;  %s755_s25 = sphi %s816_s25, %s940_s25   ;;  %s751_s24 = sphi %s814_s24, %s939_s24  }
   0x4   : > { %p27_p0 = scmp.ge.s32.totalorder %s26_s29, 3  ;;  %p46_p2 = scmp.eq.s32.totalorder %s767_s28, 0 }
   0x5   : > { %s38_s9 = sadd.s32 1, %s755_s25  ;;  %p661_p5 = scmp.ge.s32.totalorder %s767_s28, 3 }
   0x6   : > { %s944_s29 = smov (%p27_p0, %s26_s29), 0  ;;  %p845_p3 = por %p46_p2, %p45_p1 }
   0x7   : > { %s34_s8 = ssub.s32 %s763_s27, %s944_s29  ;;  %254 = sbr.rel (%p661_p5) target bundleno = 24 (0x18), region = 36 }
   0x8   : > { %p36_p4 = scmp.eq.s32.totalorder %s34_s8, 0 }
   0xa   : > { %s853_s10 = scalar_select %p36_p4, %s755_s25, %s38_s9  }
   0xc   : > { %257 = sbr.rel (!%p845_p3) target bundleno = 18 (0x12), region = 40  ;;  %s259_s11 = sand.u32 (%p845_p3), 1, %s755_s25  }
   0xd   : > { %s663_s12 = sshll.u32 (%p845_p3), %s763_s27, 2  ;;  %s662_s13 = sshll.u32 (%p845_p3), %s259_s11, 3 }
   0xe   : > { %s266_s16 = scalar_lea.vmem (%p845_p3), %s930_s0, %s663_s12  ;;  %s261_s17 = scalar_lea.vmem (%p845_p3), [#allocation3], %s662_s13 }
   0xf   : > { %v283_v0 = vld [vmem:[%s266_s16] sm:$0xf] (%p845_p3)  ;;  %v285_v1 = vld [vmem:[%s266_s16 + $0xc] sm:$0xf] (%p845_p3) }
  0x10   : > { %284 = vst [vmem:[%s261_s17] sm:$0xf] (%p845_p3), %v283_v0 }
  0x11   : > { %286 = vst [vmem:[%s261_s17 + $0x4] sm:$0xf] %v285_v1 }
  0x12 PF: > { %314 = sbr.rel (!%p845_p3) target bundleno = 24 (0x18), region = 81  ;;  %s316_s18 = sand.u32 (%p845_p3), 1, %s755_s25  }
  0x13   : > { %s665_s19 = sshll.u32 (%p845_p3), %s763_s27, 3  ;;  %s664_s20 = sshll.u32 (%p845_p3), %s316_s18, 4 }
  0x14   : > { %s323_s23 = scalar_lea.vmem (%p845_p3), %s931_s1, %s665_s19  ;;  %s318_s8 = scalar_lea.vmem (%p845_p3), [#allocation4], %s664_s20 }
  0x15   : > { %v354_v2 = vld [vmem:[%s323_s23] sm:$0xff] (%p845_p3)  ;;  %v356_v3 = vld [vmem:[%s323_s23 + $0x18] sm:$0xff] (%p845_p3) }
  0x16   : > { %355 = vst [vmem:[%s318_s8] sm:$0xff] (%p845_p3), %v354_v2 }
  0x17   : > { %357 = vst [vmem:[%s318_s8 + $0x8] sm:$0xff] %v356_v3 }
  0x18 PF: > { %p666_p6 = scmp.ge.s32.totalorder %s767_s28, 1  ;;  %p362_p7 = scmp.lt.s32.totalorder %s767_s28, 4 }
  0x1a   : > { %p363_p8 = pnand %p666_p6, %p362_p7 }
  0x1b   : > { %s369_s30 = sand.u32 (!%p363_p8), 1, %s751_s24   ;;  %p669_p9 = scmp.ne.s32.totalorder (!%p363_p8), %s759_s26, 0 }
  0x1c   : > { %366 = sbr.rel (%p363_p8) target bundleno = 792 (0x318), region = 119  ;;  %s667_s9 = sshll.u32 (!%p363_p8), %s369_s30, 3 }
  0x1d   : > { %s668_s11 = sshll.u32 (!%p363_p8), %s369_s30, 4  ;;  %s371_s12 = scalar_lea.vmem (!%p363_p8), [#allocation3], %s667_s9 }
  0x1e   : > { %s378_s13 = scalar_lea.vmem (!%p363_p8), [#allocation4], %s668_s11 }
  0x21   : > { %427 = sbr.rel (%p669_p9) target bundleno = 40 (0x28), region = 131 }
  0x26   : > { %vm428_vm0 = vcmask 254976   ;;  %v769_v4 = vmov 0.0  }
  0x27   : > { %429 = vst.msk [vmem:[#allocation2] sm:$0x3] %vm428_vm0, %v769_v4 }
  0x28 PF: > { %v434_v5 = vld [vmem:[%s378_s13] sm:$0xff]  ;;  %v770_v6 = vmov 0   ;;  %v435_v7 = vld [vmem:[%s378_s13 + $0x8] sm:$0xff]  ;;  %vm449_vm1 = vcmask 261120   ;;  %vm466_vm2 = vcmask 1041409   ;;  %vm470_vm3 = vcmask 254976  }
  0x29   : > { %725 = vset.pattern.permute.xlu0 %v770_v6  ;;  %v677_v8 = vld [vmem:[%s371_s12] sm:$0xff]   ;;  %p670_p10 = scmp.ne.s32.totalorder %s759_s26, 2 }
  0x2a   : > { %439 = vperm.xlu0 %725, %v434_v5   ;;  %v678_v9 = vunpack.c.l.bf16 %v677_v8  ;;  %v679_v14 = vunpack.c.h.bf16 %v677_v8  ;;  %s772_s17 = smov (!%p670_p10), 1   ;;  %s773_s18 = smov (!%p670_p10), 127  }
  0x2e   : > { %v436_v28 = vld [vmem:[#allocation2] sm:$0x3] }
  0x32   : > { %444 = vperm.xlu0 %725, %v435_v7  }
  0x9c   : > { %v440_v10 = vpop.permute.xlu0 %439 }
  0x9d   : > { %v447_v11 = vmul.f32 %v678_v9, %v440_v10 }
  0x9f   : > { %v450_v12 = vsel %vm449_vm1, %v447_v11, 0.0 }
  0xa0   : > { %v451_v13 = vrot.slane %v450_v12, 4 }
  0xa2   : > { %v452_v15 = vadd.f32 %v451_v13, %v450_v12 }
  0xa4   : > { %v445_v16 = vpop.permute.xlu0 %444  ;;  %v453_v18 = vrot.slane %v452_v15, 2 }
  0xa5   : > { %v448_v17 = vmul.f32 %v679_v14, %v445_v16 }
  0xa6   : > { %v454_v21 = vadd.f32 %v453_v18, %v452_v15 }
  0xa7   : > { %v457_v19 = vsel %vm449_vm1, %v448_v17, 0.0 }
  0xa8   : > { %v458_v20 = vrot.slane %v457_v19, 4  ;;  %v455_v24 = vrot.slane %v454_v21, 1 }
  0xaa   : > { %v459_v22 = vadd.f32 %v458_v20, %v457_v19  ;;  %v456_v27 = vadd.f32 %v455_v24, %v454_v21 }
  0xac   : > { %v460_v23 = vrot.slane %v459_v22, 2 }
  0xae   : > { %v461_v25 = vadd.f32 %v460_v23, %v459_v22 }
  0xb0   : > { %v462_v26 = vrot.slane %v461_v25, 1 }
  0xb2   : > { %v463_v29 = vadd.f32 %v462_v26, %v461_v25 }
  0xb3   : > { %475 = sbr.rel (%p670_p10) target bundleno = 792 (0x318), region = 135 }
  0xb4   : > { %v467_v30 = vsel %vm466_vm2, %v463_v29, %v456_v27 }
  0xb5   : > { %v469_v31 = vadd.f32 %v467_v30, %v436_v28 }
  0xb7   : > { %471 = vst.msk [vmem:[#allocation2] sm:$0x3] %vm470_vm3, %v469_v31 }
  0xb8   : > { %v477_v32 = vld [vmem:[%s932_s2] sm:$0x3]  ;;  %v487_v33 = vld [vmem:[%s933_s3 + $0x18] sm:$0xff]  ;;  %v486_v34 = vld [vmem:[%s933_s3 + $0x10] sm:$0xff]  ;;  %v771_v35 = vmov 0   ;;  %vm554_vm5 = vcmask 1024  }
  0xb9   : > { %726 = vset.pattern.permute.xlu0 %v771_v35  ;;  %507 = vmatpush.msra.mxu0 %v487_v33  ;;  %v485_v36 = vld [vmem:[%s933_s3 + $0x8] sm:$0xff]  ;;  %v484_v37 = vld [vmem:[%s933_s3] sm:$0xff]  ;;  %v518_v38 = vld [vmem:[%s935_s5 + $0x18] sm:$0xff] }
  0xba   : > { %480 = vperm.xlu0 %726, %v477_v32   ;;  %v517_v39 = vld [vmem:[%s935_s5 + $0x10] sm:$0xff]  ;;  %538 = vmatpush.msra.mxu1 %v518_v38  ;;  %v516_v43 = vld [vmem:[%s935_s5 + $0x8] sm:$0xff]  ;;  %v515_v44 = vld [vmem:[%s935_s5] sm:$0xff] }
  0xbb   : > { %508 = vmatpush.msra.mxu0 %v486_v34  ;;  %v727_v45 = vld [vmem:[%s934_s4] ss:$0 sm:$0xff] }
  0xbc   : > { %539 = vmatpush.msra.mxu1 %v517_v39  ;;  %v728_v48 = vld [vmem:[%s936_s6] ss:$0 sm:$0xff] }
  0xbd   : > { %509 = vmatpush.msra.mxu0 %v485_v36 }
  0xbe   : > { %v476_v40 = vld [vmem:[#allocation2] sm:$0x3]  ;;  %540 = vmatpush.msra.mxu1 %v516_v43 }
  0xbf   : > { %510 = vmatpush.msra.mxu0 %v484_v37 }
  0xc0   : > { %541 = vmatpush.msra.mxu1 %v515_v44 }
 0x12c   : > { %v481_v41 = vpop.permute.xlu0 %480 }
 0x12d   : > { %v483_v42 = vmul.f32 %v481_v41, %v476_v40 }
 0x12f   : > { %671 = vmatmul.msk.f32.vlgmr.msra.gmra.mxu0 %vm449_vm1, %v483_v42 }
 0x1ac   : > { %v512_v46 = vpop.f32.mrf.mxu0 }
 0x1ad   : > { %v513_v47 = vadd.f32 %v727_v45, %v512_v46 }
 0x1af   : > { %672 = vmatmul.msk.f32.vlgmr.msra.gmra.mxu1 %vm449_vm1, %v513_v47 }
 0x22c   : > { %v543_v49 = vpop.f32.mrf.mxu1 }
 0x22d   : > { %v544_v50 = vadd.f32 %v728_v48, %v543_v49 }
 0x22f   : > { %547 = vrot.lane.b32.xlu0 %v544_v50, %s772_s17 }
 0x2a1   : > { %v548_v51 = vpop.permute.xlu0 %547 }
 0x2a2   : > { %vm550_vm4 = vcmp.gt.f32.partialorder %v544_v50, %v548_v51 }
 0x2a3   : > { %v551_v52 = vsel %vm550_vm4, 1, %v771_v35 }
 0x2a4   : > { %552 = vrot.lane.b32.xlu1 %v551_v52, %s773_s18 }
 0x316   : > { %v553_v53 = vpop.permute.xlu1 %552 }
 0x317   : > { %555 = vst.msk [vmem:[%s937_s7] sm:$0x3] %vm554_vm5, %v553_v53 }
 0x318 PF: > { %s17_s28 = sadd.s32 1, %s767_s28   ;;  %s939_s24 = smov %s755_s25 }
 0x319   : > { %p14_p11 = scmp.ge.s32.totalorder %s17_s28, 5   ;;  %s940_s25 = smov %s853_s10 }
 0x31a   : > { %s941_s26 = smov %s763_s27  ;;  %s942_s27 = smov %s944_s29 }
 0x31b   :  { %16 = sbr.rel (!%p14_p11) target bundleno = 3 (0x3), region = 181 }

</bundles_post_ra>
